<compile_context>
chip_gen: v6e
topology: v6e:2x2x1
jax: 0.10.0
libtpu: 0.0.40
codegen_flags: <defaults>
</compile_context>

<pallas_src>
import jax
import jax.numpy as jnp
from jax.experimental import pallas as pl
from jax.experimental.pallas import tpu as pltpu


def _round_up(n: int, m: int) -> int:
    return (n + m - 1) // m * m


def tanh_mlp_kernel(x_ref, w1_ref, b1_ref, w2_ref, b2_ref, o_ref):
    # x_ref:  (TB, D)   current batch tile (ragged last tile: OOB rows are undefined,
    #                   but rows are independent and padded outputs are sliced off)
    # w1_ref: (D, H)    resident across grid steps (index_map -> (0, 0))
    # b1_ref: (1, H)    resident
    # w2_ref: (1, H)    resident (second-layer weights as a row)
    # b2_ref: (1,)      scalar bias in SMEM
    # o_ref:  (1, TB)   lane-dense output row for this batch tile
    x = x_ref[...]
    # If a narrower matmul dtype was requested (e.g. bf16), cast here — in VMEM/vregs —
    # rather than as a separate wrapper-side XLA pass that re-reads/writes x in HBM.
    if x.dtype != w1_ref.dtype:
        x = x.astype(w1_ref.dtype)

    # Layer 1 on the MXU; accumulate in f32 regardless of operand dtype.
    h = jnp.dot(x, w1_ref[...], preferred_element_type=jnp.float32)      # (TB, H)
    h = jnp.tanh(h + b1_ref[...].astype(jnp.float32))                    # f32 activations (v5e-safe)

    # Layer 2 (H -> 1): VPU multiply + lane reduction (MXU would be ~0.4% utilized at N=1).
    z = jnp.sum(h * w2_ref[...].astype(jnp.float32), axis=-1)            # (TB,)
    z = z + b2_ref[0]                                                    # scalar bias from SMEM

    # Lane-dense store: batch goes onto lanes as a (1, TB) row.
    o_ref[...] = jax.nn.sigmoid(z)[None, :].astype(o_ref.dtype)


def tanh_mlp(x, w1, b1, w2, b2, *, block_b=None, matmul_dtype=None,
             vmem_budget_bytes=24 * 1024 * 1024):
    """sigmoid(tanh(x @ w1 + b1) @ w2 + b2) via a Pallas TPU kernel.

    x: (B, D); w1: (D, H); b1: (1, H) or (H,); w2: (H, 1) or (H,); b2: (1,1)/(1,)/().
    matmul_dtype: operand dtype for the first matmul (e.g. jnp.bfloat16). If x is not
    already that dtype, the cast happens inside the kernel (no extra HBM pass over x).
    Returns (B, 1) f32.
    """
    B, D = x.shape
    H = w1.shape[-1] if w1.ndim == 2 else w1.shape[0]

    if matmul_dtype is None:
        matmul_dtype = x.dtype
    x_itemsize = jnp.dtype(x.dtype).itemsize
    w_itemsize = jnp.dtype(matmul_dtype).itemsize

    def _vmem_bytes(bb):
        # Double-buffered x tile + (double-buffered) resident W1 + f32 h intermediate
        # + double-buffered output row + small resident vectors.
        return (2 * bb * D * x_itemsize
                + 2 * D * H * w_itemsize
                + bb * H * 4
                + 2 * bb * 4
                + 4 * H * 4)

    if block_b is None:
        # Target ~4 MiB of x per grid step so DMA dominates the ~0.35 us per-step
        # overhead, then clamp to what B needs and to the VMEM budget.
        target_x_tile_bytes = 4 * 1024 * 1024
        bb = max(128, _round_up(target_x_tile_bytes // max(D * x_itemsize, 1), 128))
        bb = min(bb, _round_up(max(B, 1), 128))          # never bigger than needed for B
        if B >= 256:
            # v7x: 2 TensorCores share the 'parallel' batch axis — keep >= 2 grid blocks.
            bb = min(bb, _round_up(pl.cdiv(B, 2), 128))
        while bb > 128 and _vmem_bytes(bb) > vmem_budget_bytes:
            bb -= 128
        block_b = bb
    # TODO(synk): for very large D (several K), add a K grid axis ('arbitrary', last)
    # with a VMEM f32 accumulator instead of pulling the full (block_b, D) stripe.

    num_blocks = pl.cdiv(B, block_b)
    padded_B = num_blocks * block_b   # output slab only; x itself is NOT padded/copied

    # Small, one-time parameter reshapes/casts (weights are tiny; x is left untouched).
    w1_c = jnp.asarray(w1).reshape(D, H).astype(matmul_dtype)
    b1_r = jnp.asarray(b1).reshape(1, H).astype(jnp.float32)
    w2_row = jnp.asarray(w2).reshape(1, H).astype(jnp.float32)
    b2_s = jnp.asarray(b2).reshape(1).astype(jnp.float32)

    # Request enough scoped VMEM for the chosen tile (with 2x headroom), staying well
    # under v7x's 64 MiB physical VMEM.
    vmem_limit = int(min(max(32 * 1024 * 1024, 2 * _vmem_bytes(block_b)),
                         56 * 1024 * 1024))

    out_row = pl.pallas_call(
        tanh_mlp_kernel,
        out_shape=jax.ShapeDtypeStruct((1, padded_B), jnp.float32),
        grid=(num_blocks,),
        in_specs=[
            pl.BlockSpec((block_b, D), lambda i: (i, 0)),        # x: tiled over batch (ragged tail OK)
            pl.BlockSpec((D, H), lambda i: (0, 0)),              # W1: resident
            pl.BlockSpec((1, H), lambda i: (0, 0)),              # b1: resident
            pl.BlockSpec((1, H), lambda i: (0, 0)),              # W2 row: resident
            pl.BlockSpec(memory_space=pltpu.MemorySpace.SMEM),   # b2: scalar in SMEM
        ],
        out_specs=pl.BlockSpec((1, block_b), lambda i: (0, i)),  # lane-dense output row
        compiler_params=pltpu.CompilerParams(
            dimension_semantics=("parallel",),                   # shard batch tiles across TCs (v7x)
            vmem_limit_bytes=vmem_limit,
        ),
    )(x, w1_c, b1_r, w2_row, b2_s)

    return out_row[0, :B].reshape(B, 1)


if __name__ == "__main__":
    # Small shapes consistent with the module: input_dim comes from the (synthetic) dataset.
    B, D, H = 8, 32, 64

    key = jax.random.PRNGKey(0)
    kx, k1, k2, k3, k4 = jax.random.split(key, 5)

    # Deterministic parameter init (PyTorch-like uniform(-1/sqrt(fan_in), 1/sqrt(fan_in))).
    x = jax.random.normal(kx, (B, D), dtype=jnp.float32)
    lim1 = 1.0 / jnp.sqrt(jnp.float32(D))
    lim2 = 1.0 / jnp.sqrt(jnp.float32(H))
    w1 = jax.random.uniform(k1, (D, H), jnp.float32, -lim1, lim1)   # Linear(D, 64) weight^T
    b1 = jax.random.uniform(k2, (1, H), jnp.float32, -lim1, lim1)   # Linear(D, 64) bias
    w2 = jax.random.uniform(k3, (H, 1), jnp.float32, -lim2, lim2)   # Linear(64, 1) weight^T
    b2 = jax.random.uniform(k4, (1, 1), jnp.float32, -lim2, lim2)   # Linear(64, 1) bias

    # Pure-JAX reference of the forward-pass semantics.
    def ref_fn(xx):
        return jax.nn.sigmoid(jnp.dot(jnp.tanh(jnp.dot(xx, w1) + b1), w2) + b2)

    # 1) Tiny batch (single, partially-filled block).
    out = jax.block_until_ready(tanh_mlp(x, w1, b1, w2, b2))
    assert out.shape == (B, 1)
    assert jnp.allclose(out, ref_fn(x), atol=1e-5, rtol=1e-5)

    # 2) Larger, non-multiple-of-block batch: exercises multi-block grid + ragged tail
    #    (no wrapper-side pad of x).
    B2 = 300
    x2 = jax.random.normal(jax.random.PRNGKey(1), (B2, D), dtype=jnp.float32)
    out2 = jax.block_until_ready(tanh_mlp(x2, w1, b1, w2, b2))
    assert out2.shape == (B2, 1)
    assert jnp.allclose(out2, ref_fn(x2), atol=1e-5, rtol=1e-5)

    print("KERNEL_OK")
</pallas_src>

<mosaic_0001>
module attributes {stable_mosaic.version = 11 : i64} {
  func.func @tanh_mlp_kernel(%arg0: i32, %arg1: memref<128x32xf32, #tpu.memory_space<vmem>>, %arg2: memref<32x64xf32, #tpu.memory_space<vmem>>, %arg3: memref<1x64xf32, #tpu.memory_space<vmem>>, %arg4: memref<1x64xf32, #tpu.memory_space<vmem>>, %arg5: memref<1xf32, #tpu.memory_space<smem>>, %arg6: memref<1x128xf32, #tpu.memory_space<vmem>>) attributes {dimension_semantics = [#tpu.dimension_semantics<parallel>], iteration_bounds = array<i64: 1>, scalar_prefetch = 0 : i64, scratch_operands = 0 : i64, tpu.core_type = #tpu.core_type<tc>, window_params = [{transform_indices = @transform_0, window_bounds = array<i64: 128, 32>}, {pipeline_mode = #tpu.pipeline_mode<synchronous>, transform_indices = @transform_1, window_bounds = array<i64: 32, 64>}, {pipeline_mode = #tpu.pipeline_mode<synchronous>, transform_indices = @transform_2, window_bounds = array<i64: 1, 64>}, {pipeline_mode = #tpu.pipeline_mode<synchronous>, transform_indices = @transform_3, window_bounds = array<i64: 1, 64>}, {transform_indices = @transform_4, window_bounds = array<i64: 1>}, {transform_indices = @transform_5, window_bounds = array<i64: 1, 128>}]} {
    %c0 = arith.constant 0 : index
    %c0_0 = arith.constant 0 : index
    %0 = vector.load %arg1[%c0, %c0_0] : memref<128x32xf32, #tpu.memory_space<vmem>>, vector<128x32xf32>
    %c0_1 = arith.constant 0 : index
    %c0_2 = arith.constant 0 : index
    %1 = vector.load %arg2[%c0_1, %c0_2] : memref<32x64xf32, #tpu.memory_space<vmem>>, vector<32x64xf32>
    %cst = arith.constant dense<0.000000e+00> : vector<128x64xf32>
    %2 = tpu.matmul %0, %1, %cst {dimension_numbers = #tpu.dot_dimension_numbers<[1], [0], [0], [1], [0, 0, 1, 1], [], []>} : vector<128x32xf32>, vector<32x64xf32>, vector<128x64xf32> -> vector<128x64xf32>
    %c0_3 = arith.constant 0 : index
    %c0_4 = arith.constant 0 : index
    %3 = vector.load %arg3[%c0_3, %c0_4] : memref<1x64xf32, #tpu.memory_space<vmem>>, vector<1x64xf32>
    %4 = vector.broadcast %3 : vector<1x64xf32> to vector<128x64xf32>
    %5 = arith.addf %2, %4 : vector<128x64xf32>
    %6 = math.tanh %5 : vector<128x64xf32>
    %c0_5 = arith.constant 0 : index
    %c0_6 = arith.constant 0 : index
    %7 = vector.load %arg4[%c0_5, %c0_6] : memref<1x64xf32, #tpu.memory_space<vmem>>, vector<1x64xf32>
    %8 = vector.broadcast %7 : vector<1x64xf32> to vector<128x64xf32>
    %9 = arith.mulf %6, %8 : vector<128x64xf32>
    %cst_7 = arith.constant dense<0.000000e+00> : vector<128xf32>
    %10 = vector.multi_reduction <add>, %9, %cst_7 [1] : vector<128x64xf32> to vector<128xf32>
    %c0_8 = arith.constant 0 : index
    %11 = memref.load %arg5[%c0_8] : memref<1xf32, #tpu.memory_space<smem>>
    %12 = vector.broadcast %11 : f32 to vector<128xf32>
    %13 = arith.addf %10, %12 : vector<128xf32>
    %14 = arith.negf %13 : vector<128xf32>
    %15 = math.exp %14 : vector<128xf32>
    %cst_9 = arith.constant 1.000000e+00 : f32
    %16 = vector.broadcast %cst_9 : f32 to vector<128xf32>
    %17 = arith.addf %16, %15 : vector<128xf32>
    %18 = arith.divf %16, %17 : vector<128xf32>
    %19 = vector.shape_cast %18 : vector<128xf32> to vector<1x128xf32>
    %c0_10 = arith.constant 0 : index
    %c0_11 = arith.constant 0 : index
    %20 = vector.load %arg6[%c0_10, %c0_11] : memref<1x128xf32, #tpu.memory_space<vmem>>, vector<1x128xf32>
    tpu.vector_store %arg6[%c0_10, %c0_11], %19 {strides = array<i32>} : memref<1x128xf32, #tpu.memory_space<vmem>>, vector<1x128xf32>,
    return
  }
  func.func @transform_0(%arg0: i32) -> (i32, i32) {
    %c0_i32 = arith.constant 0 : i32
    %c0_i32_0 = arith.constant 0 : i32
    return %arg0, %c0_i32 : i32, i32
  }
  func.func @transform_1(%arg0: i32) -> (i32, i32) {
    %c0_i32 = arith.constant 0 : i32
    %c0_i32_0 = arith.constant 0 : i32
    %c0_i32_1 = arith.constant 0 : i32
    return %c0_i32, %c0_i32_0 : i32, i32
  }
  func.func @transform_2(%arg0: i32) -> (i32, i32) {
    %c0_i32 = arith.constant 0 : i32
    %c0_i32_0 = arith.constant 0 : i32
    %c0_i32_1 = arith.constant 0 : i32
    return %c0_i32, %c0_i32_0 : i32, i32
  }
  func.func @transform_3(%arg0: i32) -> (i32, i32) {
    %c0_i32 = arith.constant 0 : i32
    %c0_i32_0 = arith.constant 0 : i32
    %c0_i32_1 = arith.constant 0 : i32
    return %c0_i32, %c0_i32_0 : i32, i32
  }
  func.func @transform_4(%arg0: i32) -> i32 {
    %c0_i32 = arith.constant 0 : i32
    %c0_i32_0 = arith.constant 0 : i32
    return %c0_i32 : i32
  }
  func.func @transform_5(%arg0: i32) -> (i32, i32) {
    %c0_i32 = arith.constant 0 : i32
    %c0_i32_0 = arith.constant 0 : i32
    return %c0_i32, %arg0 : i32, i32
  }
}

</mosaic_0001>

<bundles_post_ra>
// kernel: tpu_custom_call.1
= control target key start
LH: loop header
LB: loop body
LE: loop exit
PB: predicated region body
PF: predicated region fallthrough
CT: control target
= control target key end

     0   :  { %11 = vsyncpa [#allocation4], 0  ;;  %s1037_s0 = inlined_call_operand.hbm [shape: f32[8,32], index: 0, kind: input, shape index: {}]   ;;  %s1038_s1 = inlined_call_operand.hbm [shape: f32[32,64], index: 1, kind: input, shape index: {}]   ;;  %s1039_s2 = inlined_call_operand.vmem [shape: f32[1,64], index: 2, kind: input, shape index: {}]   ;;  %s1040_s3 = inlined_call_operand.vmem [shape: f32[1,64], index: 3, kind: input, shape index: {}]   ;;  %s1041_s4 = inlined_call_operand.<no memory space> [shape: f32[1], index: 4, kind: input, shape index: {}]   ;;  %s1042_s5 = inlined_call_operand.hbm [shape: f32[1,128], index: 5, kind: output, shape index: {}]  }
   0x1   :  { %12 = vsyncpa [#allocation7], 0 }
   0x2   :  { %13 = vsyncpa [#allocation5], 0 }
   0x3   :  { %18 = vsyncadd [#allocation4], 1920  ;;  %s879_s18 = smov [#allocation3]  }
   0x4   :  { %s19_s19 = sshll.u32 %s879_s18, 4  ;;  %s20_s19 = int_to_ptr.vmem [resolvable:$true] %s19_s19 }
   0x5   :  { %s821_s20 = scalar_lea.vmem %s20_s19, 128  ;;  %s825_s21 = scalar_lea.vmem %s20_s19, 2048 }
   0x6   :  { %p822_p0 = scmp.ne.s32.totalorder %s20_s19, %s821_s20  ;;  %p826_p1 = scmp.lt.s32.totalorder %s20_s19, %s20_s19 }
   0x7   :  { %p827_p2 = scmp.lt.s32.totalorder %s825_s21, %s821_s20 }
   0x9   :  { %p828_p3 = por %p827_p2, %p826_p1 }
   0xb   :  { %p829_p4 = pnand %p828_p3, %p822_p0 }
   0xd   :  { %832 = shalt.err (!%p829_p4)
}
   0xe   :  { %s880_s22 = smov 128   ;;  %s881_s23 = smov 8  }
   0xf   :  { %25 = dma.hbm_to_vmem [thread:$0]  %s1037_s0, 128, %s20_s19, [#allocation4], %s880_s22, %s880_s22, %s881_s23  }
  0x10   :  { %s882_s26 = smov [#allocation6]  }
  0x11   :  { %s31_s27 = sshll.u32 %s882_s26, 4  ;;  %s32_s27 = int_to_ptr.vmem [resolvable:$true] %s31_s27 }
  0x12   :  { %s841_s28 = scalar_lea.vmem %s32_s27, 512  ;;  %p846_p6 = scmp.lt.s32.totalorder %s32_s27, %s32_s27 }
  0x13   :  { %p842_p5 = scmp.ne.s32.totalorder %s32_s27, %s841_s28  ;;  %p847_p7 = scmp.lt.s32.totalorder %s841_s28, %s841_s28 }
  0x15   :  { %p848_p8 = por %p847_p7, %p846_p6 }
  0x17   :  { %p849_p9 = pnand %p848_p8, %p842_p5 }
  0x19   :  { %852 = shalt.err (!%p849_p9)
}
  0x1a   :  { %37 = dma.hbm_to_vmem [thread:$0]  %s1038_s1, 512, %s32_s27, [#allocation7], %s880_s22, %s880_s22, %s881_s23  }
  0x1b   :  { %873 = dma.done.wait [#allocation4], 2048  }
  0x1c   :  { %874 = vsyncadd [#allocation4], 4294965248 }
  0x1d   :  { %875 = dma.done.wait [#allocation7], 512  }
  0x1e   :  { %876 = vsyncadd [#allocation7], 4294966784  ;;  %v69_v0 = vld [vmem:[#allocation6 + $0x18] sm:$0xff]  ;;  %v68_v1 = vld [vmem:[#allocation6 + $0x10] sm:$0xff]  ;;  %vm77_vm0 = vcmask 261120   ;;  %vm310_vm1 = vcmask 523264  }
  0x1f   :  { %672 = vmatprep.subr.mxu0 %v69_v0  ;;  %704 = vmatprep.subr.mxu1 %v69_v0  ;;  %v67_v2 = vld [vmem:[#allocation6 + $0x8] sm:$0xff]  ;;  %v66_v3 = vld [vmem:[#allocation6] sm:$0xff]  ;;  %v52_v8 = vld [vmem:[#allocation3 + $0x10] sm:$0xff]  ;;  %vm500_vm2 = vcmask 130112   ;;  %vm507_vm3 = vcmask 195712   ;;  %vm514_vm4 = vcmask 261312  }
  0x20   :  { %673 = vmatpush3.msra.mxu0 %v69_v0  ;;  %708 = vmatpush3.msra.mxu1 %v69_v0  ;;  %v50_v4 = vld [vmem:[#allocation3] sm:$0xff]  ;;  %v51_v6 = vld [vmem:[#allocation3 + $0x8] sm:$0xff]  ;;  %v60_v9 = vld [vmem:[#allocation3 + $0x50] sm:$0xff]  ;;  %vm521_vm5 = vcmask 326912   ;;  %vm528_vm6 = vcmask 392512   ;;  %vm535_vm7 = vcmask 458112  }
  0x21   :  { %674 = vmatprep.subr.mxu0 %v68_v1  ;;  %705 = vmatprep.subr.mxu1 %v68_v1  ;;  %v58_v5 = vld [vmem:[#allocation3 + $0x40] sm:$0xff]  ;;  %v59_v7 = vld [vmem:[#allocation3 + $0x48] sm:$0xff]  ;;  %v53_v10 = vld [vmem:[#allocation3 + $0x18] sm:$0xff]  ;;  %vm542_vm8 = vcmask 523712   ;;  %vm549_vm9 = vcmask 589312   ;;  %vm556_vm10 = vcmask 654912  }
  0x22   :  { %675 = vmatpush3.msra.mxu0 %v68_v1  ;;  %709 = vmatpush3.msra.mxu1 %v68_v1  ;;  %v61_v11 = vld [vmem:[#allocation3 + $0x58] sm:$0xff]  ;;  %v54_v12 = vld [vmem:[#allocation3 + $0x20] sm:$0xff]  ;;  %v55_v14 = vld [vmem:[#allocation3 + $0x28] sm:$0xff]  ;;  %vm563_vm11 = vcmask 720512   ;;  %vm570_vm12 = vcmask 786112   ;;  %vm577_vm13 = vcmask 851712  }
  0x23   :  { %676 = vmatprep.subr.mxu0 %v67_v2  ;;  %706 = vmatprep.subr.mxu1 %v67_v2  ;;  %v62_v13 = vld [vmem:[#allocation3 + $0x60] sm:$0xff]  ;;  %v63_v15 = vld [vmem:[#allocation3 + $0x68] sm:$0xff]  ;;  %v56_v16 = vld [vmem:[#allocation3 + $0x30] sm:$0xff]  ;;  %vm584_vm14 = vcmask 917312   ;;  %vm591_vm15 = vcmask 982912  }
  0x24   :  { %677 = vmatpush3.msra.mxu0 %v67_v2  ;;  %710 = vmatpush3.msra.mxu1 %v67_v2  ;;  %v64_v17 = vld [vmem:[#allocation3 + $0x70] sm:$0xff]  ;;  %v57_v18 = vld [vmem:[#allocation3 + $0x38] sm:$0xff]  ;;  %v939_v20 = vld [vmem:[%s1039_s2] ss:$0 sm:$0xff] }
  0x25   :  { %678 = vmatprep.subr.mxu0 %v66_v3  ;;  %707 = vmatprep.subr.mxu1 %v66_v3  ;;  %v65_v19 = vld [vmem:[#allocation3 + $0x78] sm:$0xff]  ;;  %v954_v45 = vld [vmem:[%s1040_s3] ss:$0 sm:$0xff] }
  0x26   :  { %679 = vmatpush3.msra.mxu0 %v66_v3  ;;  %711 = vmatpush3.msra.mxu1 %v66_v3 }
  0x27   :  { %680 = vmatprep.mubr.msk.f32.mxu0 %vm77_vm0, %v50_v4  ;;  %692 = vmatprep.mubr.msk.f32.mxu1 %vm77_vm0, %v58_v5 }
  0x28   :  { %681 = vmatmul.mubr.msk.f32.vlgmr.msra.gmra.mxu0 %vm77_vm0, %v51_v6  ;;  %693 = vmatmul.mubr.msk.f32.vlgmr.msra.gmra.mxu1 %vm77_vm0, %v59_v7 }
  0x29   :  { %683 = vmatprep.mubr.msk.f32.mxu0 %vm77_vm0, %v52_v8  ;;  %695 = vmatprep.mubr.msk.f32.mxu1 %vm77_vm0, %v60_v9 }
  0x2c   :  { %684 = vmatmul.mubr.msk.f32.gmra.mxu0 %vm77_vm0, %v53_v10  ;;  %696 = vmatmul.mubr.msk.f32.gmra.mxu1 %vm77_vm0, %v61_v11 }
  0x2d   :  { %686 = vmatprep.mubr.msk.f32.mxu0 %vm77_vm0, %v54_v12  ;;  %698 = vmatprep.mubr.msk.f32.mxu1 %vm77_vm0, %v62_v13 }
  0x30   :  { %687 = vmatmul.mubr.msk.f32.gmra.mxu0 %vm77_vm0, %v55_v14  ;;  %699 = vmatmul.mubr.msk.f32.gmra.mxu1 %vm77_vm0, %v63_v15 }
  0x31   :  { %689 = vmatprep.mubr.msk.f32.mxu0 %vm77_vm0, %v56_v16  ;;  %701 = vmatprep.mubr.msk.f32.mxu1 %vm77_vm0, %v64_v17 }
  0x34   :  { %690 = vmatmul.mubr.msk.f32.gmra.mxu0 %vm77_vm0, %v57_v18  ;;  %702 = vmatmul.mubr.msk.f32.gmra.mxu1 %vm77_vm0, %v65_v19  ;;  %vm598_vm0 = vcmask 1048512  }
  0xe8   :  { %v682_v21 = vpop.f32.mrf.mxu0  ;;  %v694_v22 = vpop.f32.mrf.mxu1 }
  0xe9   :  { %v198_v23 = vadd.f32 %v682_v21, %v939_v20  ;;  %v238_v24 = vadd.f32 %v694_v22, %v939_v20 }
  0xea   :  { %v192_v25 = vpop.f32.mrf.mxu0  ;;  %v232_v26 = vpop.f32.mrf.mxu1 }
  0xeb   :  { %717 = vtanh.f32 %v198_v23  ;;  %v193_v27 = vadd.f32 %v939_v20, %v192_v25  ;;  %v233_v28 = vadd.f32 %v939_v20, %v232_v26 }
  0xec   :  { %719 = vtanh.f32 %v238_v24  ;;  %v685_v29 = vpop.f32.mrf.mxu0  ;;  %v697_v30 = vpop.f32.mrf.mxu1 }
  0xed   :  { %721 = vtanh.f32 %v193_v27  ;;  %v208_v31 = vadd.f32 %v685_v29, %v939_v20  ;;  %v248_v32 = vadd.f32 %v697_v30, %v939_v20 }
  0xee   :  { %723 = vtanh.f32 %v233_v28  ;;  %v202_v33 = vpop.f32.mrf.mxu0  ;;  %v242_v34 = vpop.f32.mrf.mxu1 }
  0xef   :  { %725 = vtanh.f32 %v208_v31  ;;  %v243_v35 = vadd.f32 %v939_v20, %v242_v34  ;;  %v203_v36 = vadd.f32 %v939_v20, %v202_v33 }
  0xf0   :  { %727 = vtanh.f32 %v248_v32  ;;  %v688_v37 = vpop.f32.mrf.mxu0  ;;  %v700_v38 = vpop.f32.mrf.mxu1 }
  0xf1   :  { %729 = vtanh.f32 %v243_v35  ;;  %v218_v41 = vadd.f32 %v688_v37, %v939_v20  ;;  %v258_v60 = vadd.f32 %v700_v38, %v939_v20 }
  0xf2   :  { %v212_v39 = vpop.f32.mrf.mxu0  ;;  %731 = vtanh.f32 %v203_v36  ;;  %v252_v43 = vpop.f32.mrf.mxu1 }
  0xf3   :  { %v213_v40 = vadd.f32 %v939_v20, %v212_v39  ;;  %v253_v54 = vadd.f32 %v939_v20, %v252_v43 }
  0xf4   :  { %v691_v42 = vpop.f32.mrf.mxu0  ;;  %v703_v49 = vpop.f32.mrf.mxu1 }
  0xf5   :  { %733 = vtanh.f32 %v213_v40  ;;  %v228_v48 = vadd.f32 %v691_v42, %v939_v20  ;;  %v268_v6 = vadd.f32 %v703_v49, %v939_v20  ;;  %v360_v40 = vstv %s1041_s4  ;;  %s883_s4 = smov [#allocation8]  }
  0xf6   :  { %v222_v44 = vpop.f32.mrf.mxu0  ;;  %735 = vtanh.f32 %v218_v41  ;;  %v262_v61 = vpop.f32.mrf.mxu1  ;;  %s608_s8 = sshll.u32 %s883_s4, 4  ;;  %s609_s8 = int_to_ptr.vmem [resolvable:$true] %s608_s8 }
  0xf7   :  { %v223_v46 = vadd.f32 %v939_v20, %v222_v44  ;;  %v263_v3 = vadd.f32 %v939_v20, %v262_v61  ;;  %s853_s9 = scalar_lea.vmem %s609_s8, 16  ;;  %s857_s10 = scalar_lea.vmem %s609_s8, 32 }
  0xf8   :  { %v718_v47 = vpop.eup %717  ;;  %p854_p10 = scmp.ne.s32.totalorder %s609_s8, %s853_s9  ;;  %p858_p11 = scmp.lt.s32.totalorder %s609_s8, %s609_s8 }
  0xf9   :  { %v720_v50 = vpop.eup %719  ;;  %v295_v51 = vmul.f32 %v718_v47, %v954_v45  ;;  %737 = vtanh.f32 %v223_v46  ;;  %p859_p12 = scmp.lt.s32.totalorder %s857_s10, %s853_s9 }
  0xfa   :  { %v722_v52 = vpop.eup %721  ;;  %v303_v53 = vmul.f32 %v720_v50, %v954_v45  ;;  %739 = vtanh.f32 %v228_v48 }
  0xfb   :  { %v724_v55 = vpop.eup %723  ;;  %v314_v56 = vsel %vm310_vm1, %v295_v51, 0.0  ;;  %v294_v57 = vmul.f32 %v722_v52, %v954_v45  ;;  %741 = vtanh.f32 %v253_v54  ;;  %p860_p13 = por %p859_p12, %p858_p11 }
  0xfc   :  { %v726_v58 = vpop.eup %725  ;;  %v338_v59 = vsel %vm310_vm1, %v303_v53, 0.0  ;;  %315 = vadd.xlane.f32.xlu0 %v314_v56  ;;  %v302_v4 = vmul.f32 %v724_v55, %v954_v45  ;;  %743 = vtanh.f32 %v258_v60 }
  0xfd   :  { %v728_v62 = vpop.eup %727  ;;  %339 = vadd.xlane.f32.xlu1 %v338_v59  ;;  %v297_v63 = vmul.f32 %v726_v58, %v954_v45  ;;  %v311_v2 = vsel %vm310_vm1, %v294_v57, 0.0  ;;  %745 = vtanh.f32 %v263_v3  ;;  %p861_p0 = pnand %p860_p13, %p854_p10 }
  0xfe   :  { %v305_v0 = vmul.f32 %v728_v62, %v954_v45  ;;  %v730_v5 = vpop.eup %729  ;;  %v335_v9 = vsel %vm310_vm1, %v302_v4, 0.0  ;;  %747 = vtanh.f32 %v268_v6 }
  0xff   :  { %v320_v1 = vsel %vm310_vm1, %v297_v63, 0.0  ;;  %v732_v7 = vpop.eup %731  ;;  %v304_v10 = vmul.f32 %v730_v5, %v954_v45 }
 0x100   :  { %312 = vadd.xlane.f32.xlu0 %v311_v2  ;;  %v344_v8 = vsel %vm310_vm1, %v305_v0, 0.0  ;;  %v296_v12 = vmul.f32 %v732_v7, %v954_v45 }
 0x101   :  { %321 = vadd.xlane.f32.xlu1 %v320_v1  ;;  %v341_v14 = vsel %vm310_vm1, %v304_v10, 0.0 }
 0x102   :  { %v734_v11 = vpop.eup %733  ;;  %v317_v17 = vsel %vm310_vm1, %v296_v12, 0.0 }
 0x103   :  { %v736_v13 = vpop.eup %735  ;;  %v298_v15 = vmul.f32 %v734_v11, %v954_v45 }
 0x104   :  { %336 = vadd.xlane.f32.xlu0 %v335_v9  ;;  %v299_v18 = vmul.f32 %v736_v13, %v954_v45 }
 0x105   :  { %345 = vadd.xlane.f32.xlu1 %v344_v8  ;;  %v323_v21 = vsel %vm310_vm1, %v298_v15, 0.0 }
 0x106   :  { %v738_v16 = vpop.eup %737  ;;  %v326_v23 = vsel %vm310_vm1, %v299_v18, 0.0 }
 0x107   :  { %v740_v19 = vpop.eup %739  ;;  %v300_v22 = vmul.f32 %v738_v16, %v954_v45 }
 0x108   :  { %342 = vadd.xlane.f32.xlu0 %v341_v14  ;;  %v742_v20 = vpop.eup %741  ;;  %v301_v24 = vmul.f32 %v740_v19, %v954_v45 }
 0x109   :  { %318 = vadd.xlane.f32.xlu1 %v317_v17  ;;  %v744_v25 = vpop.eup %743  ;;  %v329_v26 = vsel %vm310_vm1, %v300_v22, 0.0  ;;  %v306_v27 = vmul.f32 %v742_v20, %v954_v45 }
 0x10a   :  { %v746_v28 = vpop.eup %745  ;;  %v332_v29 = vsel %vm310_vm1, %v301_v24, 0.0  ;;  %v307_v30 = vmul.f32 %v744_v25, %v954_v45 }
 0x10b   :  { %v748_v31 = vpop.eup %747  ;;  %v347_v32 = vsel %vm310_vm1, %v306_v27, 0.0  ;;  %v308_v33 = vmul.f32 %v746_v28, %v954_v45 }
 0x10c   :  { %324 = vadd.xlane.f32.xlu0 %v323_v21  ;;  %v350_v34 = vsel %vm310_vm1, %v307_v30, 0.0  ;;  %v309_v35 = vmul.f32 %v748_v31, %v954_v45  ;;  %v489_v30 = vlaneseq }
 0x10d   :  { %327 = vadd.xlane.f32.xlu1 %v326_v23  ;;  %v353_v36 = vsel %vm310_vm1, %v308_v33, 0.0 }
 0x10e   :  { %v356_v37 = vsel %vm310_vm1, %v309_v35, 0.0 }
 0x110   :  { %330 = vadd.xlane.f32.xlu0 %v329_v26 }
 0x111   :  { %333 = vadd.xlane.f32.xlu1 %v332_v29 }
 0x114   :  { %348 = vadd.xlane.f32.xlu0 %v347_v32 }
 0x115   :  { %351 = vadd.xlane.f32.xlu1 %v350_v34 }
 0x118   :  { %354 = vadd.xlane.f32.xlu0 %v353_v36  ;;  %v997_v36 = vand.u32 127, %v489_v30 }
 0x119   :  { %357 = vadd.xlane.f32.xlu1 %v356_v37 }
 0x185   :  { %v316_v38 = vpop.xlane.xlu0 %315 }
 0x186   :  { %v340_v39 = vpop.xlane.xlu1 %339  ;;  %v362_v42 = vadd.f32 %v360_v40, %v316_v38 }
 0x187   :  { %v370_v51 = vadd.f32 %v360_v40, %v340_v39 }
 0x188   :  { %v637_v45 = vmul.f32 -1.442695, %v362_v42 }
 0x189   :  { %v313_v41 = vpop.xlane.xlu0 %312  ;;  %v645_v58 = vmul.f32 -1.442695, %v370_v51 }
 0x18a   :  { %v322_v43 = vpop.xlane.xlu1 %321  ;;  %v361_v44 = vadd.f32 %v360_v40, %v313_v41 }
 0x18b   :  { %v364_v48 = vadd.f32 %v360_v40, %v322_v43  ;;  %v502_v43 = vadd.s32 4294967280, %v997_v36 }
 0x18c   :  { %v636_v46 = vmul.f32 -1.442695, %v361_v44 }
 0x18d   :  { %v337_v47 = vpop.xlane.xlu0 %336  ;;  %v639_v52 = vmul.f32 -1.442695, %v364_v48 }
 0x18e   :  { %v346_v49 = vpop.xlane.xlu1 %345  ;;  %749 = vpow2.f32 %v636_v46  ;;  %v369_v54 = vadd.f32 %v360_v40, %v337_v47  ;;  %v1000_v46 = vshrl.u32 %v489_v30, 7 }
 0x18f   :  { %751 = vpow2.f32 %v637_v45  ;;  %v372_v59 = vadd.f32 %v360_v40, %v346_v49  ;;  %v495_v45 = vadd.s32 4294967288, %v997_v36 }
 0x190   :  { %753 = vpow2.f32 %v639_v52  ;;  %v644_v62 = vmul.f32 -1.442695, %v369_v54  ;;  %v509_v52 = vadd.s32 4294967272, %v997_v36 }
 0x191   :  { %v343_v50 = vpop.xlane.xlu0 %342  ;;  %v647_v4 = vmul.f32 -1.442695, %v372_v59 }
 0x192   :  { %v319_v53 = vpop.xlane.xlu1 %318  ;;  %v371_v63 = vadd.f32 %v360_v40, %v343_v50 }
 0x193   :  { %v363_v55 = vadd.f32 %v360_v40, %v319_v53  ;;  %v493_v53 = vsub.s32 %v997_v36, %v1000_v46 }
 0x194   :  { %v646_v7 = vmul.f32 -1.442695, %v371_v63 }
 0x195   :  { %v638_v56 = vmul.f32 -1.442695, %v363_v55  ;;  %v325_v57 = vpop.xlane.xlu0 %324 }
 0x196   :  { %v328_v60 = vpop.xlane.xlu1 %327  ;;  %v365_v61 = vadd.f32 %v360_v40, %v325_v57 }
 0x197   :  { %755 = vpow2.f32 %v638_v56  ;;  %v366_v0 = vadd.f32 %v360_v40, %v328_v60  ;;  %v505_v56 = vsub.s32 %v502_v43, %v1000_v46 }
 0x198   :  { %v640_v2 = vmul.f32 -1.442695, %v365_v61  ;;  %757 = vpow2.f32 %v645_v58  ;;  %v498_v58 = vsub.s32 %v495_v45, %v1000_v46  ;;  %v516_v61 = vadd.s32 4294967264, %v997_v36 }
 0x199   :  { %v641_v1 = vmul.f32 -1.442695, %v366_v0  ;;  %v331_v3 = vpop.xlane.xlu0 %330  ;;  %759 = vpow2.f32 %v644_v62  ;;  %v512_v0 = vsub.s32 %v509_v52, %v1000_v46 }
 0x19a   :  { %v334_v5 = vpop.xlane.xlu1 %333  ;;  %v367_v6 = vadd.f32 %v360_v40, %v331_v3 }
 0x19b   :  { %v368_v8 = vadd.f32 %v360_v40, %v334_v5  ;;  %v750_v9 = vpop.eup %749  ;;  %761 = vpow2.f32 %v641_v1 }
 0x19c   :  { %763 = vpow2.f32 %v640_v2  ;;  %v642_v11 = vmul.f32 -1.442695, %v367_v6  ;;  %v752_v15 = vpop.eup %751  ;;  %v425_v16 = vadd.f32 1.0, %v750_v9  ;;  %v523_v2 = vadd.s32 4294967256, %v997_v36 }
 0x19d   :  { %v643_v10 = vmul.f32 -1.442695, %v368_v8  ;;  %v349_v12 = vpop.xlane.xlu0 %348  ;;  %765 = vpow2.f32 %v647_v4  ;;  %v426_v21 = vadd.f32 1.0, %v752_v15  ;;  %v754_v24 = vpop.eup %753 }
 0x19e   :  { %v352_v13 = vpop.xlane.xlu1 %351  ;;  %v373_v14 = vadd.f32 %v360_v40, %v349_v12  ;;  %767 = vpow2.f32 %v646_v7  ;;  %v428_v31 = vadd.f32 1.0, %v754_v24  ;;  %v537_v7 = vadd.s32 4294967240, %v997_v36 }
 0x19f   :  { %v374_v17 = vadd.f32 %v360_v40, %v352_v13  ;;  %769 = vpow2.f32 %v643_v10  ;;  %v519_v10 = vsub.s32 %v516_v61, %v1000_v46  ;;  %v558_v24 = vadd.s32 4294967216, %v997_v36 }
 0x1a0   :  { %771 = vpow2.f32 %v642_v11  ;;  %v648_v19 = vmul.f32 -1.442695, %v373_v14  ;;  %v530_v11 = vadd.s32 4294967248, %v997_v36  ;;  %v526_v14 = vsub.s32 %v523_v2, %v1000_v46 }
 0x1a1   :  { %v649_v18 = vmul.f32 -1.442695, %v374_v17  ;;  %v355_v20 = vpop.xlane.xlu0 %354  ;;  %773 = vrcp.f32 %v425_v16  ;;  %v544_v16 = vadd.s32 4294967232, %v997_v36 }
 0x1a2   :  { %v358_v22 = vpop.xlane.xlu1 %357  ;;  %v375_v23 = vadd.f32 %v360_v40, %v355_v20 }
 0x1a3   :  { %v376_v25 = vadd.f32 %v360_v40, %v358_v22  ;;  %775 = vpow2.f32 %v649_v18 }
 0x1a4   :  { %v756_v26 = vpop.eup %755  ;;  %777 = vpow2.f32 %v648_v19  ;;  %v650_v29 = vmul.f32 -1.442695, %v375_v23  ;;  %v551_v19 = vadd.s32 4294967224, %v997_v36  ;;  %v533_v23 = vsub.s32 %v530_v11, %v1000_v46 }
 0x1a5   :  { %v427_v27 = vadd.f32 1.0, %v756_v26  ;;  %v651_v28 = vmul.f32 -1.442695, %v376_v25  ;;  %779 = vrcp.f32 %v426_v21  ;;  %v758_v32 = vpop.eup %757  ;;  %v540_v21 = vsub.s32 %v537_v7, %v1000_v46 }
 0x1a6   :  { %v760_v33 = vpop.eup %759  ;;  %v434_v47 = vadd.f32 1.0, %v758_v32 }
 0x1a7   :  { %781 = vrcp.f32 %v427_v27  ;;  %v433_v39 = vadd.f32 1.0, %v760_v33  ;;  %v579_v33 = vadd.s32 4294967192, %v997_v36 }
 0x1a8   :  { %783 = vpow2.f32 %v651_v28  ;;  %v762_v34 = vpop.eup %761  ;;  %v565_v28 = vadd.s32 4294967208, %v997_v36 }
 0x1a9   :  { %785 = vpow2.f32 %v650_v29  ;;  %v764_v35 = vpop.eup %763  ;;  %v430_v37 = vadd.f32 1.0, %v762_v34  ;;  %v572_v29 = vadd.s32 4294967200, %v997_v36 }
 0x1aa   :  { %787 = vrcp.f32 %v428_v31  ;;  %v766_v38 = vpop.eup %765  ;;  %v429_v40 = vadd.f32 1.0, %v764_v35  ;;  %v547_v31 = vsub.s32 %v544_v16, %v1000_v46  ;;  %v554_v35 = vsub.s32 %v551_v19, %v1000_v46 }
 0x1ab   :  { %v768_v41 = vpop.eup %767  ;;  %789 = vrcp.f32 %v430_v37  ;;  %v436_v54 = vadd.f32 1.0, %v766_v38  ;;  %v593_v38 = vadd.s32 4294967176, %v997_v36  ;;  %v575_v45 = vsub.s32 %v572_v29, %v1000_v46 }
 0x1ac   :  { %v770_v42 = vpop.eup %769  ;;  %791 = vrcp.f32 %v429_v40  ;;  %v435_v49 = vadd.f32 1.0, %v768_v41  ;;  %v561_v41 = vsub.s32 %v558_v24, %v1000_v46 }
 0x1ad   :  { %v772_v44 = vpop.eup %771  ;;  %v432_v48 = vadd.f32 1.0, %v770_v42  ;;  %793 = vrcp.f32 %v433_v39  ;;  %v586_v42 = vadd.s32 4294967184, %v997_v36 }
 0x1ae   :  { %v431_v50 = vadd.f32 1.0, %v772_v44  ;;  %v774_v51 = vpop.eup %773 }
 0x1af   :  { %795 = vrcp.f32 %v432_v48  ;;  %v494_v1 = vrot.slane %v774_v51, %v493_v53  ;;  %v582_v51 = vsub.s32 %v579_v33, %v1000_v46 }
 0x1b0   :  { %v776_v55 = vpop.eup %775  ;;  %797 = vrcp.f32 %v431_v50 }
 0x1b1   :  { %v778_v57 = vpop.eup %777  ;;  %799 = vrcp.f32 %v434_v47  ;;  %v438_v59 = vadd.f32 1.0, %v776_v55  ;;  %v568_v47 = vsub.s32 %v565_v28, %v1000_v46  ;;  %v596_v55 = vsub.s32 %v593_v38, %v1000_v46 }
 0x1b2   :  { %v780_v60 = vpop.eup %779  ;;  %801 = vrcp.f32 %v435_v49  ;;  %v437_v62 = vadd.f32 1.0, %v778_v57 }
 0x1b3   :  { %803 = vrcp.f32 %v436_v54  ;;  %v499_v6 = vrot.slane %v780_v60, %v498_v58  ;;  %v589_v58 = vsub.s32 %v586_v42, %v1000_v46 }
 0x1b4   :  { %v782_v63 = vpop.eup %781  ;;  %805 = vrcp.f32 %v437_v62 }
 0x1b5   :  { %v784_v3 = vpop.eup %783  ;;  %v506_v4 = vrot.slane %v782_v63, %v505_v56  ;;  %807 = vrcp.f32 %v438_v59  ;;  %v501_v13 = vsel %vm500_vm2, %v499_v6, %v494_v1 }
 0x1b6   :  { %v786_v5 = vpop.eup %785  ;;  %v440_v8 = vadd.f32 1.0, %v784_v3 }
 0x1b7   :  { %v788_v9 = vpop.eup %787  ;;  %v439_v12 = vadd.f32 1.0, %v786_v5  ;;  %v508_v17 = vsel %vm507_vm3, %v506_v4, %v501_v13 }
 0x1b8   :  { %809 = vrcp.f32 %v440_v8  ;;  %v790_v15 = vpop.eup %789  ;;  %v513_v20 = vrot.slane %v788_v9, %v512_v0 }
 0x1b9   :  { %811 = vrcp.f32 %v439_v12  ;;  %v792_v18 = vpop.eup %791  ;;  %v527_v26 = vrot.slane %v790_v15, %v526_v14 }
 0x1ba   :  { %v520_v22 = vrot.slane %v792_v18, %v519_v10  ;;  %v794_v25 = vpop.eup %793  ;;  %v515_v27 = vsel %vm514_vm4, %v513_v20, %v508_v17 }
 0x1bb   :  { %v548_v49 = vrot.slane %v794_v25, %v547_v31 }
 0x1bc   :  { %v796_v30 = vpop.eup %795  ;;  %v522_v32 = vsel %vm521_vm5, %v520_v22, %v515_v27 }
 0x1bd   :  { %v798_v34 = vpop.eup %797  ;;  %v541_v37 = vrot.slane %v796_v30, %v540_v21  ;;  %v529_v44 = vsel %vm528_vm6, %v527_v26, %v522_v32 }
 0x1be   :  { %v800_v39 = vpop.eup %799  ;;  %v534_v40 = vrot.slane %v798_v34, %v533_v23 }
 0x1bf   :  { %v802_v43 = vpop.eup %801  ;;  %v555_v53 = vrot.slane %v800_v39, %v554_v35 }
 0x1c0   :  { %v804_v48 = vpop.eup %803  ;;  %v536_v50 = vsel %vm535_vm7, %v534_v40, %v529_v44  ;;  %v562_v57 = vrot.slane %v802_v43, %v561_v41 }
 0x1c1   :  { %v806_v52 = vpop.eup %805  ;;  %v543_v54 = vsel %vm542_vm8, %v541_v37, %v536_v50  ;;  %v569_v60 = vrot.slane %v804_v48, %v568_v47 }
 0x1c2   :  { %v808_v36 = vpop.eup %807  ;;  %v550_v56 = vsel %vm549_vm9, %v548_v49, %v543_v54  ;;  %v576_v63 = vrot.slane %v806_v52, %v575_v45 }
 0x1c3   :  { %v557_v59 = vsel %vm556_vm10, %v555_v53, %v550_v56  ;;  %v583_v2 = vrot.slane %v808_v36, %v582_v51 }
 0x1c4   :  { %v564_v62 = vsel %vm563_vm11, %v562_v57, %v557_v59 }
 0x1c5   :  { %v810_v61 = vpop.eup %809  ;;  %v571_v1 = vsel %vm570_vm12, %v569_v60, %v564_v62 }
 0x1c6   :  { %v812_v0 = vpop.eup %811  ;;  %v597_v3 = vrot.slane %v810_v61, %v596_v55  ;;  %v578_v4 = vsel %vm577_vm13, %v576_v63, %v571_v1 }
 0x1c7   :  { %v590_v5 = vrot.slane %v812_v0, %v589_v58  ;;  %v585_v6 = vsel %vm584_vm14, %v583_v2, %v578_v4 }
 0x1c9   :  { %v592_v7 = vsel %vm591_vm15, %v590_v5, %v585_v6 }
 0x1ca   :  { %v599_v46 = vsel %vm598_vm0, %v597_v3, %v592_v7 }
 0x1cb   :  { %601 = vst [vmem:[#allocation8] sm:$0x1] %v599_v46 }
 0x1cc   :  { %864 = shalt.err (!%p861_p0)
}
 0x1cd   :  { %611 = dma.vmem_to_hbm [thread:$0]  %s609_s8, 16, %s1042_s5, [#allocation5]  }
 0x1ce   :  { %877 = dma.done.wait [#allocation5], 16  }
 0x1cf   :  { %878 = vsyncadd [#allocation5], 4294967280 }
 0x1d0   :  { %615 = vsyncpa [#allocation4], 1 }
 0x1d1   :  { %616 = vsyncpa [#allocation7], 1 }
 0x1d2   :  { %617 = vsyncpa [#allocation5], 1 }

</bundles_post_ra>
